<compile_context>
chip_gen: v5e
topology: v5e:2x2
jax: 0.10.0
libtpu: 0.0.40
codegen_flags: <defaults>
</compile_context>

<pallas_src>
import math
from typing import NamedTuple

import jax
import jax.numpy as jnp
from jax import lax
from jax.experimental import pallas as pl
from jax.experimental.pallas import tpu as pltpu


def _round_up(x, m):
    return (x + m - 1) // m * m


class SkipGramParams(NamedTuple):
    table: jax.Array   # (Vtot_pad, D_pad) block-diagonal fused table
    Vw: int
    Vp: int
    Dw: int
    Dp: int


def build_fused_table(word_table, pos1_table, pos2_table):
    """Build the block-diagonal, lane-padded lookup table ONCE (init-time).

    Layout (rows x cols):
        [ word_table (Vw x Dw) |        0        |        0        ]
        [          0           | pos1 (Vp x Dp)  |        0        ]
        [          0           |        0        | pos2 (Vp x Dp)  ]
    padded to (round_up(Vw+2Vp, 8), round_up(Dw+2Dp, 128)).
    """
    Vw, Dw = word_table.shape
    Vp, Dp = pos1_table.shape
    assert pos2_table.shape == (Vp, Dp)
    Dtot = Dw + 2 * Dp
    D_pad = _round_up(Dtot, 128)
    Vtot = Vw + 2 * Vp
    Vtot_pad = _round_up(Vtot, 8)

    tab = jnp.zeros((Vtot_pad, D_pad), jnp.float32)
    tab = tab.at[:Vw, :Dw].set(word_table.astype(jnp.float32))
    tab = tab.at[Vw:Vw + Vp, Dw:Dw + Dp].set(pos1_table.astype(jnp.float32))
    tab = tab.at[Vw + Vp:Vtot, Dw + Dp:Dtot].set(pos2_table.astype(jnp.float32))
    return SkipGramParams(table=tab, Vw=Vw, Vp=Vp, Dw=Dw, Dp=Dp)


def skipgram_kernel(idx_ref, tab_ref, out_ref):
    """Fused embedding gather via one block-diagonal one-hot matmul.

    idx_ref : (TILE_N, 3) int32 — columns = word/pos1/pos2 indices, already
              offset into the block-diagonal table's row space.
    tab_ref : (Vtot_pad, D_pad) f32, grid-invariant (single-buffered).
    out_ref : (TILE_N, D_pad) f32 — one lane-dense store, already in its
              final concatenated layout.
    """
    tab = tab_ref[...]
    idx = idx_ref[...]
    n = out_ref.shape[0]
    vtot = tab.shape[0]

    # One shared iota for all three one-hots (JAX does not CSE broadcast_in_dim).
    iota = lax.broadcasted_iota(jnp.int32, (n, vtot), 1)
    onehot = ((idx[:, 0:1] == iota)
              | (idx[:, 1:2] == iota)
              | (idx[:, 2:3] == iota)).astype(tab.dtype)

    # Single MXU push: (TILE_N, Vtot) @ (Vtot, D_pad) -> (TILE_N, D_pad).
    out_ref[...] = jnp.dot(onehot, tab, preferred_element_type=jnp.float32)


def _pallas_forward(idx, tab, N, tile_n, single_buffer_tab):
    Vtot_pad, D_pad = tab.shape
    grid = (pl.cdiv(N, tile_n),)   # cdiv grid: no row padding, no row slice

    idx_spec = pl.BlockSpec((tile_n, 3), lambda i: (i, 0))
    if single_buffer_tab:
        # Grid-invariant -> no lookahead needed; halve its VMEM footprint.
        tab_spec = pl.BlockSpec((Vtot_pad, D_pad), lambda i: (0, 0),
                                pipeline_mode=pl.Buffered(1))
    else:
        tab_spec = pl.BlockSpec((Vtot_pad, D_pad), lambda i: (0, 0))
    out_spec = pl.BlockSpec((tile_n, D_pad), lambda i: (i, 0))

    cost = pl.CostEstimate(
        flops=2 * N * Vtot_pad * D_pad,
        transcendentals=0,
        bytes_accessed=N * 3 * 4 + Vtot_pad * D_pad * 4 + N * D_pad * 4,
    )

    # VMEM budget from the actual per-step footprint (double-buffered idx/out,
    # 1-2 table buffers, one-hot temporary), capped at 60 MiB for v7x safety.
    n_tab_buf = 1 if single_buffer_tab else 2
    vmem_need = (2 * tile_n * 128 * 4             # idx blocks (lane-padded est.)
                 + n_tab_buf * Vtot_pad * D_pad * 4
                 + 2 * tile_n * D_pad * 4         # output blocks
                 + 2 * tile_n * Vtot_pad * 4)     # one-hot + slack
    vmem_limit = int(min(max(vmem_need + (8 << 20), 32 << 20), 60 << 20))

    return pl.pallas_call(
        skipgram_kernel,
        out_shape=jax.ShapeDtypeStruct((N, D_pad), jnp.float32),
        grid=grid,
        in_specs=[idx_spec, tab_spec],
        out_specs=out_spec,
        compiler_params=pltpu.CompilerParams(
            dimension_semantics=("parallel",),   # megacore / v7x 2-TC sharding
            vmem_limit_bytes=vmem_limit,
        ),
        cost_estimate=cost,
    )(idx, tab)


def skipgram_forward(word, pos1, pos2, params: SkipGramParams, *, tile_n=1024):
    """word/pos1/pos2: (B, L) int indices. Returns (B, L, Dw + 2*Dp) float32."""
    tab, Vw, Vp, Dw, Dp = params
    B, L = word.shape
    N = B * L
    Dtot = Dw + 2 * Dp

    # Merge the three index streams into ONE (N, 3) int32 array, pre-offset
    # into the block-diagonal row space -> one per-step DMA instead of three.
    idx = jnp.stack(
        [word.reshape(N).astype(jnp.int32),
         pos1.reshape(N).astype(jnp.int32) + Vw,
         pos2.reshape(N).astype(jnp.int32) + Vw + Vp],
        axis=1)

    tile_n = max(8, min(_round_up(tile_n, 8), _round_up(N, 8)))

    out = None
    # Prefer the single-buffered table spec; fall back to the default
    # (double-buffered) spec if this jax build rejects pl.Buffered(1).
    for single_buffer_tab in (True, False):
        try:
            out = _pallas_forward(idx, tab, N, tile_n, single_buffer_tab)
            break
        except Exception:
            if not single_buffer_tab:
                raise

    # Only the lane-dim slice (D_pad -> Dtot) remains; no row padding/slicing.
    return out[:, :Dtot].reshape(B, L, Dtot)


def _reference(word, pos1, pos2, word_table, pos1_table, pos2_table):
    return jnp.concatenate(
        [jnp.take(word_table, word, axis=0),
         jnp.take(pos1_table, pos1, axis=0),
         jnp.take(pos2_table, pos2, axis=0)], axis=2)


if __name__ == "__main__":
    # ---- deterministic parameter / input construction (mirrors __init__) ----
    key = jax.random.PRNGKey(0)
    k_wv, k_unk, k_p1, k_p2, k_iw, k_i1, k_i2 = jax.random.split(key, 7)

    vocab_size = 16              # word_vec_mat.shape[0]
    word_embedding_dim = 50
    pos_dim = 12
    pos_embedding_dim = 5

    # word embedding table: [word_vec_mat ; unk ; blk] -> (vocab+2, Dw),
    # padding row (index vocab+1) = 0.
    word_vec_mat = jax.random.normal(k_wv, (vocab_size, word_embedding_dim),
                                     dtype=jnp.float32)
    unk = jax.random.normal(k_unk, (1, word_embedding_dim),
                            dtype=jnp.float32) / math.sqrt(word_embedding_dim)
    blk = jnp.zeros((1, word_embedding_dim), dtype=jnp.float32)
    word_table = jnp.concatenate([word_vec_mat, unk, blk], axis=0)

    # pos embedding tables: (pos_dim+1, Dp), padding row (index pos_dim) = 0.
    def make_pos_table(k):
        t = jax.random.normal(k, (pos_dim + 1, pos_embedding_dim),
                              dtype=jnp.float32)
        return t.at[pos_dim].set(0.0)

    pos1_table = make_pos_table(k_p1)
    pos2_table = make_pos_table(k_p2)

    Dtot = word_embedding_dim + 2 * pos_embedding_dim

    # Fused block-diagonal table built ONCE (hoisted out of the forward path).
    params = build_fused_table(word_table, pos1_table, pos2_table)

    # ---- case 1: tiny (B=2, L=8), single grid step ----
    batch, max_length = 2, 8
    word = jax.random.randint(k_iw, (batch, max_length), 0, vocab_size + 2,
                              dtype=jnp.int32)
    pos1 = jax.random.randint(k_i1, (batch, max_length), 0, pos_dim + 1,
                              dtype=jnp.int32)
    pos2 = jax.random.randint(k_i2, (batch, max_length), 0, pos_dim + 1,
                              dtype=jnp.int32)

    out = jax.block_until_ready(skipgram_forward(word, pos1, pos2, params))
    ref = _reference(word, pos1, pos2, word_table, pos1_table, pos2_table)
    assert out.shape == (batch, max_length, Dtot)
    assert jnp.allclose(out, ref, atol=1e-5), "mismatch vs. JAX reference (small)"

    # ---- case 2: multi-tile grid (B=4, L=32, tile_n=64 -> grid=(2,)) ----
    batch2, max_length2 = 4, 32
    kw2, kp12, kp22 = jax.random.split(jax.random.PRNGKey(1), 3)
    word2 = jax.random.randint(kw2, (batch2, max_length2), 0, vocab_size + 2,
                               dtype=jnp.int32)
    pos1_2 = jax.random.randint(kp12, (batch2, max_length2), 0, pos_dim + 1,
                                dtype=jnp.int32)
    pos2_2 = jax.random.randint(kp22, (batch2, max_length2), 0, pos_dim + 1,
                                dtype=jnp.int32)

    out2 = jax.block_until_ready(
        skipgram_forward(word2, pos1_2, pos2_2, params, tile_n=64))
    ref2 = _reference(word2, pos1_2, pos2_2,
                      word_table, pos1_table, pos2_table)
    assert out2.shape == (batch2, max_length2, Dtot)
    assert jnp.allclose(out2, ref2, atol=1e-5), "mismatch vs. JAX reference (tiled)"

    # ---- case 3: non-divisible grid (B=3, L=40 -> N=120, tile_n=64,
    #              grid=(2,), partial last block handled by Pallas) ----
    batch3, max_length3 = 3, 40
    kw3, kp13, kp23 = jax.random.split(jax.random.PRNGKey(2), 3)
    word3 = jax.random.randint(kw3, (batch3, max_length3), 0, vocab_size + 2,
                               dtype=jnp.int32)
    pos1_3 = jax.random.randint(kp13, (batch3, max_length3), 0, pos_dim + 1,
                                dtype=jnp.int32)
    pos2_3 = jax.random.randint(kp23, (batch3, max_length3), 0, pos_dim + 1,
                                dtype=jnp.int32)

    out3 = jax.block_until_ready(
        skipgram_forward(word3, pos1_3, pos2_3, params, tile_n=64))
    ref3 = _reference(word3, pos1_3, pos2_3,
                      word_table, pos1_table, pos2_table)
    assert out3.shape == (batch3, max_length3, Dtot)
    assert jnp.allclose(out3, ref3, atol=1e-5), "mismatch vs. JAX reference (ragged)"

    print("KERNEL_OK")
</pallas_src>

<mosaic_0001>
module attributes {stable_mosaic.version = 11 : i64} {
  func.func @skipgram_kernel(%arg0: i32, %arg1: memref<16x3xi32, #tpu.memory_space<vmem>>, %arg2: memref<48x128xf32, #tpu.memory_space<vmem>>, %arg3: memref<16x128xf32, #tpu.memory_space<vmem>>) attributes {dimension_semantics = [#tpu.dimension_semantics<parallel>], iteration_bounds = array<i64: 1>, scalar_prefetch = 0 : i64, scratch_operands = 0 : i64, tpu.core_type = #tpu.core_type<tc>, window_params = [{transform_indices = @transform_0, window_bounds = array<i64: 16, 3>}, {pipeline_mode = #tpu.pipeline_mode<synchronous>, transform_indices = @transform_1, window_bounds = array<i64: 48, 128>}, {transform_indices = @transform_2, window_bounds = array<i64: 16, 128>}]} {
    %c0 = arith.constant 0 : index
    %c0_0 = arith.constant 0 : index
    %0 = vector.load %arg2[%c0, %c0_0] : memref<48x128xf32, #tpu.memory_space<vmem>>, vector<48x128xf32>
    %c0_1 = arith.constant 0 : index
    %c0_2 = arith.constant 0 : index
    %1 = vector.load %arg1[%c0_1, %c0_2] : memref<16x3xi32, #tpu.memory_space<vmem>>, vector<16x3xi32>
    %2 = tpu.iota {dimensions = array<i32: 1>} : vector<16x48xi32>
    %3 = vector.extract_strided_slice %1 {offsets = [0, 0], sizes = [16, 1], strides = [1, 1]} : vector<16x3xi32> to vector<16x1xi32>
    %4 = vector.broadcast %3 : vector<16x1xi32> to vector<16x48xi32>
    %5 = arith.cmpi eq, %4, %2 : vector<16x48xi32>
    %6 = vector.extract_strided_slice %1 {offsets = [0, 1], sizes = [16, 1], strides = [1, 1]} : vector<16x3xi32> to vector<16x1xi32>
    %7 = vector.broadcast %6 : vector<16x1xi32> to vector<16x48xi32>
    %8 = arith.cmpi eq, %7, %2 : vector<16x48xi32>
    %9 = arith.ori %5, %8 : vector<16x48xi1>
    %10 = vector.extract_strided_slice %1 {offsets = [0, 2], sizes = [16, 1], strides = [1, 1]} : vector<16x3xi32> to vector<16x1xi32>
    %11 = vector.broadcast %10 : vector<16x1xi32> to vector<16x48xi32>
    %12 = arith.cmpi eq, %11, %2 : vector<16x48xi32>
    %13 = arith.ori %9, %12 : vector<16x48xi1>
    %14 = arith.extui %13 : vector<16x48xi1> to vector<16x48xi32>
    %15 = arith.sitofp %14 : vector<16x48xi32> to vector<16x48xf32>
    %cst = arith.constant dense<0.000000e+00> : vector<16x128xf32>
    %16 = tpu.matmul %15, %0, %cst {dimension_numbers = #tpu.dot_dimension_numbers<[1], [0], [0], [1], [0, 0, 1, 1], [], []>} : vector<16x48xf32>, vector<48x128xf32>, vector<16x128xf32> -> vector<16x128xf32>
    %c0_3 = arith.constant 0 : index
    %c0_4 = arith.constant 0 : index
    %17 = vector.load %arg3[%c0_3, %c0_4] : memref<16x128xf32, #tpu.memory_space<vmem>>, vector<16x128xf32>
    tpu.vector_store %arg3[%c0_3, %c0_4], %16 {strides = array<i32>} : memref<16x128xf32, #tpu.memory_space<vmem>>, vector<16x128xf32>,
    return
  }
  func.func @transform_0(%arg0: i32) -> (i32, i32) {
    %c0_i32 = arith.constant 0 : i32
    %c0_i32_0 = arith.constant 0 : i32
    return %arg0, %c0_i32 : i32, i32
  }
  func.func @transform_1(%arg0: i32) -> (i32, i32) {
    %c0_i32 = arith.constant 0 : i32
    %c0_i32_0 = arith.constant 0 : i32
    %c0_i32_1 = arith.constant 0 : i32
    return %c0_i32, %c0_i32_0 : i32, i32
  }
  func.func @transform_2(%arg0: i32) -> (i32, i32) {
    %c0_i32 = arith.constant 0 : i32
    %c0_i32_0 = arith.constant 0 : i32
    return %arg0, %c0_i32 : i32, i32
  }
}

module attributes {stable_mosaic.version = 11 : i64} {
  func.func @skipgram_kernel(%arg0: i32, %arg1: memref<16x3xi32, #tpu.memory_space<vmem>>, %arg2: memref<48x128xf32, #tpu.memory_space<vmem>>, %arg3: memref<16x128xf32, #tpu.memory_space<vmem>>) attributes {dimension_semantics = [#tpu.dimension_semantics<parallel>], iteration_bounds = array<i64: 1>, scalar_prefetch = 0 : i64, scratch_operands = 0 : i64, tpu.core_type = #tpu.core_type<tc>, window_params = [{transform_indices = @transform_0, window_bounds = array<i64: 16, 3>}, {pipeline_mode = #tpu.pipeline_mode<synchronous>, transform_indices = @transform_1, window_bounds = array<i64: 48, 128>}, {transform_indices = @transform_2, window_bounds = array<i64: 16, 128>}]} {
    %c0 = arith.constant 0 : index
    %c0_0 = arith.constant 0 : index
    %0 = vector.load %arg2[%c0, %c0_0] : memref<48x128xf32, #tpu.memory_space<vmem>>, vector<48x128xf32>
    %c0_1 = arith.constant 0 : index
    %c0_2 = arith.constant 0 : index
    %1 = vector.load %arg1[%c0_1, %c0_2] : memref<16x3xi32, #tpu.memory_space<vmem>>, vector<16x3xi32>
    %2 = tpu.iota {dimensions = array<i32: 1>} : vector<16x48xi32>
    %3 = vector.extract_strided_slice %1 {offsets = [0, 0], sizes = [16, 1], strides = [1, 1]} : vector<16x3xi32> to vector<16x1xi32>
    %4 = vector.broadcast %3 : vector<16x1xi32> to vector<16x48xi32>
    %5 = arith.cmpi eq, %4, %2 : vector<16x48xi32>
    %6 = vector.extract_strided_slice %1 {offsets = [0, 1], sizes = [16, 1], strides = [1, 1]} : vector<16x3xi32> to vector<16x1xi32>
    %7 = vector.broadcast %6 : vector<16x1xi32> to vector<16x48xi32>
    %8 = arith.cmpi eq, %7, %2 : vector<16x48xi32>
    %9 = arith.ori %5, %8 : vector<16x48xi1>
    %10 = vector.extract_strided_slice %1 {offsets = [0, 2], sizes = [16, 1], strides = [1, 1]} : vector<16x3xi32> to vector<16x1xi32>
    %11 = vector.broadcast %10 : vector<16x1xi32> to vector<16x48xi32>
    %12 = arith.cmpi eq, %11, %2 : vector<16x48xi32>
    %13 = arith.ori %9, %12 : vector<16x48xi1>
    %14 = arith.extui %13 : vector<16x48xi1> to vector<16x48xi32>
    %15 = arith.sitofp %14 : vector<16x48xi32> to vector<16x48xf32>
    %cst = arith.constant dense<0.000000e+00> : vector<16x128xf32>
    %16 = tpu.matmul %15, %0, %cst {dimension_numbers = #tpu.dot_dimension_numbers<[1], [0], [0], [1], [0, 0, 1, 1], [], []>} : vector<16x48xf32>, vector<48x128xf32>, vector<16x128xf32> -> vector<16x128xf32>
    %c0_3 = arith.constant 0 : index
    %c0_4 = arith.constant 0 : index
    %17 = vector.load %arg3[%c0_3, %c0_4] : memref<16x128xf32, #tpu.memory_space<vmem>>, vector<16x128xf32>
    tpu.vector_store %arg3[%c0_3, %c0_4], %16 {strides = array<i32>} : memref<16x128xf32, #tpu.memory_space<vmem>>, vector<16x128xf32>,
    return
  }
  func.func @transform_0(%arg0: i32) -> (i32, i32) {
    %c0_i32 = arith.constant 0 : i32
    %c0_i32_0 = arith.constant 0 : i32
    return %arg0, %c0_i32 : i32, i32
  }
  func.func @transform_1(%arg0: i32) -> (i32, i32) {
    %c0_i32 = arith.constant 0 : i32
    %c0_i32_0 = arith.constant 0 : i32
    %c0_i32_1 = arith.constant 0 : i32
    return %c0_i32, %c0_i32_0 : i32, i32
  }
  func.func @transform_2(%arg0: i32) -> (i32, i32) {
    %c0_i32 = arith.constant 0 : i32
    %c0_i32_0 = arith.constant 0 : i32
    return %arg0, %c0_i32 : i32, i32
  }
}

</mosaic_0001>

<bundles_post_ra>
// kernel: tpu_custom_call.1
= control target key start
LH: loop header
LB: loop body
LE: loop exit
PB: predicated region body
PF: predicated region fallthrough
CT: control target
= control target key end

     0   :  { %7 = vsyncpa [#allocation3], 0  ;;  %s236_s0 = inlined_call_operand.vmem [shape: s32[16,3], index: 0, kind: input, shape index: {}]   ;;  %s237_s1 = inlined_call_operand.hbm [shape: f32[48,128], index: 1, kind: input, shape index: {}]   ;;  %s238_s2 = inlined_call_operand.hbm [shape: f32[16,128], index: 2, kind: output, shape index: {}]  }
   0x1   :  { %8 = vsyncpa [#allocation4], 0  ;;  %s15_s11 = sshll.u32 %s237_s1, 4  ;;  %s195_s12 = smov [#allocation2]   ;;  %s16_s11 = int_to_ptr.hbm [resolvable:$true] %s15_s11 }
   0x2   :  { %s17_s13 = sshll.u32 %s195_s12, 4  ;;  %s196_s14 = smov 128   ;;  %s18_s13 = int_to_ptr.vmem [resolvable:$true] %s17_s13 }
   0x3   :  { %s197_s15 = smov 8  }
   0x4   :  { %23 = dma.hbm_to_vmem [thread:$0]  %s16_s11, 768, %s18_s13, [#allocation3], %s196_s14, %s196_s14, %s197_s15  }
   0x5   :  { %191 = dma.done.wait [#allocation3], 768  }
   0x6   :  { %192 = vsyncadd [#allocation3], 4294966528  ;;  %v198_v0 = vmov 1   ;;  %v199_v1 = vmov 0   ;;  %v200_v2 = vmov 2   ;;  %v34_v3 = vld [vmem:[%s236_s0] sm:$0xff]  ;;  %v36_v11 = vlaneseq }
   0x7   :  { %140 = vset.pattern.permute.xlu1 %v198_v0  ;;  %139 = vset.pattern.permute.xlu0 %v199_v1  ;;  %v35_v4 = vld [vmem:[%s236_s0 + $0x8] sm:$0xff]  ;;  %v32_v6 = vld [vmem:[#allocation2 + $0x20] sm:$0xff]  ;;  %v31_v7 = vld [vmem:[#allocation2 + $0x18] sm:$0xff]  ;;  %vm70_vm4 = vcmask 392192   ;;  %v201_v16 = vmov 0.0   ;;  %s202_s0 = smov [#allocation5]  }
   0x8   :  { %141 = vset.pattern.permute.xlu2 %v200_v2  ;;  %47 = vperm.xlu1 %140, %v34_v3   ;;  %v33_v5 = vld [vmem:[#allocation2 + $0x28] sm:$0xff]  ;;  %v30_v8 = vld [vmem:[#allocation2 + $0x10] sm:$0xff]  ;;  %v28_v10 = vld [vmem:[#allocation2] sm:$0xff]  ;;  %v37_v12 = vand.u32 127, %v36_v11  ;;  %s106_s19 = sshll.u32 %s202_s0, 4  ;;  %s108_s22 = sshll.u32 %s238_s2, 4  ;;  %s107_s19 = int_to_ptr.vmem [resolvable:$true] %s106_s19  ;;  %s109_s22 = int_to_ptr.hbm [resolvable:$true] %s108_s22 }
   0x9   :  { %39 = vperm.xlu0 %139, %v34_v3   ;;  %57 = vperm.xlu2 %141, %v34_v3   ;;  %v29_v9 = vld [vmem:[#allocation2 + $0x8] sm:$0xff] }
   0xa   :  { %87 = vmatpush.msra.mxu0 %v33_v5  ;;  %125 = vmatpush.msra.mxu1 %v33_v5 }
   0xc   :  { %88 = vmatpush.msra.mxu0 %v32_v6  ;;  %126 = vmatpush.msra.mxu1 %v32_v6 }
   0xe   :  { %89 = vmatpush.msra.mxu0 %v31_v7  ;;  %127 = vmatpush.msra.mxu1 %v31_v7 }
  0x10   :  { %50 = vperm.xlu1 %140, %v35_v4   ;;  %90 = vmatpush.msra.mxu0 %v30_v8 }
  0x11   :  { %42 = vperm.xlu0 %139, %v35_v4   ;;  %60 = vperm.xlu2 %141, %v35_v4  }
  0x12   :  { %128 = vmatpush.msra.mxu1 %v30_v8  ;;  %91 = vmatpush.msra.mxu0 %v29_v9 }
  0x14   :  { %129 = vmatpush.msra.mxu1 %v29_v9  ;;  %92 = vmatpush.msra.mxu0 %v28_v10 }
  0x16   :  { %130 = vmatpush.msra.mxu1 %v28_v10 }
  0x19   :  { %142 = vset.pattern.permute.xlu0 %v200_v2 }
  0x63   :  { %v58_v13 = vpop.permute.xlu2 %57 }
  0x64   :  { %vm62_vm0 = vcmp.eq.s32.totalorder %v58_v13, %v37_v12 }
  0x6b   :  { %v61_v18 = vpop.permute.xlu2 %60 }
  0x6c   :  { %vm63_vm8 = vcmp.eq.s32.totalorder %v61_v18, %v37_v12 }
  0x7a   :  { %v48_v14 = vpop.permute.xlu1 %47 }
  0x7b   :  { %v40_v15 = vpop.permute.xlu0 %39  ;;  %vm52_vm1 = vcmp.eq.s32.totalorder %v48_v14, %v37_v12 }
  0x7c   :  { %vm44_vm2 = vcmp.eq.s32.totalorder %v40_v15, %v37_v12 }
  0x7d   :  { %vm54_vm3 = vmor %vm44_vm2, %vm52_vm1 }
  0x7e   :  { %vm64_vm5 = vmor %vm54_vm3, %vm62_vm0 }
  0x7f   :  { %v121_v17 = vsel %vm64_vm5, 1.0, %v201_v16 }
  0x80   :  { %123 = vmatmul.msk.f32.vlgmr.msra.gmra.mxu0 %vm70_vm4, %v121_v17 }
  0x82   :  { %v51_v19 = vpop.permute.xlu1 %50 }
  0x83   :  { %v43_v20 = vpop.permute.xlu0 %42  ;;  %vm53_vm6 = vcmp.eq.s32.totalorder %v51_v19, %v37_v12 }
  0x84   :  { %vm45_vm7 = vcmp.eq.s32.totalorder %v43_v20, %v37_v12 }
  0x85   :  { %vm55_vm9 = vmor %vm45_vm7, %vm53_vm6 }
  0x86   :  { %vm65_vm10 = vmor %vm55_vm9, %vm63_vm8 }
  0x87   :  { %v122_v21 = vsel %vm65_vm10, 1.0, %v201_v16 }
  0x88   :  { %124 = vmatmul.msk.f32.vlgmr.msra.gmra.mxu1 %vm70_vm4, %v122_v21 }
  0xfd   :  { %v94_v22 = vpop.f32.mrf.mxu0 }
  0xfe   :  { %100 = vst [vmem:[#allocation5] sm:$0xff] %v94_v22 }
 0x105   :  { %v97_v23 = vpop.f32.mrf.mxu1 }
 0x106   :  { %101 = vst [vmem:[#allocation5 + $0x8] sm:$0xff] %v97_v23 }
 0x107   :  { %114 = dma.vmem_to_hbm [thread:$0]  %s107_s19, 256, %s109_s22, [#allocation4], %s196_s14, %s196_s14, %s197_s15  }
 0x108   :  { %193 = dma.done.wait [#allocation4], 256  }
 0x109   :  { %194 = vsyncadd [#allocation4], 4294967040 }
 0x10a   :  { %119 = vsyncpa [#allocation3], 1 }
 0x10b   :  { %120 = vsyncpa [#allocation4], 1 }

// kernel: tpu_custom_call.1
= control target key start
LH: loop header
LB: loop body
LE: loop exit
PB: predicated region body
PF: predicated region fallthrough
CT: control target
= control target key end

     0   :  { %7 = vsyncpa [#allocation3], 0  ;;  %s236_s0 = inlined_call_operand.vmem [shape: s32[16,3], index: 0, kind: input, shape index: {}]   ;;  %s237_s1 = inlined_call_operand.hbm [shape: f32[48,128], index: 1, kind: input, shape index: {}]   ;;  %s238_s2 = inlined_call_operand.hbm [shape: f32[16,128], index: 2, kind: output, shape index: {}]  }
   0x1   :  { %8 = vsyncpa [#allocation4], 0  ;;  %s15_s11 = sshll.u32 %s237_s1, 4  ;;  %s195_s12 = smov [#allocation2]   ;;  %s16_s11 = int_to_ptr.hbm [resolvable:$true] %s15_s11 }
   0x2   :  { %s17_s13 = sshll.u32 %s195_s12, 4  ;;  %s196_s14 = smov 128   ;;  %s18_s13 = int_to_ptr.vmem [resolvable:$true] %s17_s13 }
   0x3   :  { %s197_s15 = smov 8  }
   0x4   :  { %23 = dma.hbm_to_vmem [thread:$0]  %s16_s11, 768, %s18_s13, [#allocation3], %s196_s14, %s196_s14, %s197_s15  }
   0x5   :  { %191 = dma.done.wait [#allocation3], 768  }
   0x6   :  { %192 = vsyncadd [#allocation3], 4294966528  ;;  %v198_v0 = vmov 1   ;;  %v199_v1 = vmov 0   ;;  %v200_v2 = vmov 2   ;;  %v34_v3 = vld [vmem:[%s236_s0] sm:$0xff]  ;;  %v36_v11 = vlaneseq }
   0x7   :  { %140 = vset.pattern.permute.xlu1 %v198_v0  ;;  %139 = vset.pattern.permute.xlu0 %v199_v1  ;;  %v35_v4 = vld [vmem:[%s236_s0 + $0x8] sm:$0xff]  ;;  %v32_v6 = vld [vmem:[#allocation2 + $0x20] sm:$0xff]  ;;  %v31_v7 = vld [vmem:[#allocation2 + $0x18] sm:$0xff]  ;;  %vm70_vm4 = vcmask 392192   ;;  %v201_v16 = vmov 0.0   ;;  %s202_s0 = smov [#allocation5]  }
   0x8   :  { %141 = vset.pattern.permute.xlu2 %v200_v2  ;;  %47 = vperm.xlu1 %140, %v34_v3   ;;  %v33_v5 = vld [vmem:[#allocation2 + $0x28] sm:$0xff]  ;;  %v30_v8 = vld [vmem:[#allocation2 + $0x10] sm:$0xff]  ;;  %v28_v10 = vld [vmem:[#allocation2] sm:$0xff]  ;;  %v37_v12 = vand.u32 127, %v36_v11  ;;  %s106_s19 = sshll.u32 %s202_s0, 4  ;;  %s108_s22 = sshll.u32 %s238_s2, 4  ;;  %s107_s19 = int_to_ptr.vmem [resolvable:$true] %s106_s19  ;;  %s109_s22 = int_to_ptr.hbm [resolvable:$true] %s108_s22 }
   0x9   :  { %39 = vperm.xlu0 %139, %v34_v3   ;;  %57 = vperm.xlu2 %141, %v34_v3   ;;  %v29_v9 = vld [vmem:[#allocation2 + $0x8] sm:$0xff] }
   0xa   :  { %87 = vmatpush.msra.mxu0 %v33_v5  ;;  %125 = vmatpush.msra.mxu1 %v33_v5 }
   0xc   :  { %88 = vmatpush.msra.mxu0 %v32_v6  ;;  %126 = vmatpush.msra.mxu1 %v32_v6 }
   0xe   :  { %89 = vmatpush.msra.mxu0 %v31_v7  ;;  %127 = vmatpush.msra.mxu1 %v31_v7 }
  0x10   :  { %50 = vperm.xlu1 %140, %v35_v4   ;;  %90 = vmatpush.msra.mxu0 %v30_v8 }
  0x11   :  { %42 = vperm.xlu0 %139, %v35_v4   ;;  %60 = vperm.xlu2 %141, %v35_v4  }
  0x12   :  { %128 = vmatpush.msra.mxu1 %v30_v8  ;;  %91 = vmatpush.msra.mxu0 %v29_v9 }
  0x14   :  { %129 = vmatpush.msra.mxu1 %v29_v9  ;;  %92 = vmatpush.msra.mxu0 %v28_v10 }
  0x16   :  { %130 = vmatpush.msra.mxu1 %v28_v10 }
  0x19   :  { %142 = vset.pattern.permute.xlu0 %v200_v2 }
  0x63   :  { %v58_v13 = vpop.permute.xlu2 %57 }
  0x64   :  { %vm62_vm0 = vcmp.eq.s32.totalorder %v58_v13, %v37_v12 }
  0x6b   :  { %v61_v18 = vpop.permute.xlu2 %60 }
  0x6c   :  { %vm63_vm8 = vcmp.eq.s32.totalorder %v61_v18, %v37_v12 }
  0x7a   :  { %v48_v14 = vpop.permute.xlu1 %47 }
  0x7b   :  { %v40_v15 = vpop.permute.xlu0 %39  ;;  %vm52_vm1 = vcmp.eq.s32.totalorder %v48_v14, %v37_v12 }
  0x7c   :  { %vm44_vm2 = vcmp.eq.s32.totalorder %v40_v15, %v37_v12 }
  0x7d   :  { %vm54_vm3 = vmor %vm44_vm2, %vm52_vm1 }
  0x7e   :  { %vm64_vm5 = vmor %vm54_vm3, %vm62_vm0 }
  0x7f   :  { %v121_v17 = vsel %vm64_vm5, 1.0, %v201_v16 }
  0x80   :  { %123 = vmatmul.msk.f32.vlgmr.msra.gmra.mxu0 %vm70_vm4, %v121_v17 }
  0x82   :  { %v51_v19 = vpop.permute.xlu1 %50 }
  0x83   :  { %v43_v20 = vpop.permute.xlu0 %42  ;;  %vm53_vm6 = vcmp.eq.s32.totalorder %v51_v19, %v37_v12 }
  0x84   :  { %vm45_vm7 = vcmp.eq.s32.totalorder %v43_v20, %v37_v12 }
  0x85   :  { %vm55_vm9 = vmor %vm45_vm7, %vm53_vm6 }
  0x86   :  { %vm65_vm10 = vmor %vm55_vm9, %vm63_vm8 }
  0x87   :  { %v122_v21 = vsel %vm65_vm10, 1.0, %v201_v16 }
  0x88   :  { %124 = vmatmul.msk.f32.vlgmr.msra.gmra.mxu1 %vm70_vm4, %v122_v21 }
  0xfd   :  { %v94_v22 = vpop.f32.mrf.mxu0 }
  0xfe   :  { %100 = vst [vmem:[#allocation5] sm:$0xff] %v94_v22 }
 0x105   :  { %v97_v23 = vpop.f32.mrf.mxu1 }
 0x106   :  { %101 = vst [vmem:[#allocation5 + $0x8] sm:$0xff] %v97_v23 }
 0x107   :  { %114 = dma.vmem_to_hbm [thread:$0]  %s107_s19, 256, %s109_s22, [#allocation4], %s196_s14, %s196_s14, %s197_s15  }
 0x108   :  { %193 = dma.done.wait [#allocation4], 256  }
 0x109   :  { %194 = vsyncadd [#allocation4], 4294967040 }
 0x10a   :  { %119 = vsyncpa [#allocation3], 1 }
 0x10b   :  { %120 = vsyncpa [#allocation4], 1 }

</bundles_post_ra>
